<compile_context>
chip_gen: v7x
topology: tpu7x:2x2x1
jax: 0.10.0
libtpu: 0.0.40
codegen_flags: <defaults>
</compile_context>

<pallas_src>
import functools

import jax
import jax.numpy as jnp
from jax.experimental import pallas as pl
from jax.experimental.pallas import tpu as pltpu


def _round_up(x, m):
    return ((x + m - 1) // m) * m


def _sublane_multiple(itemsize):
    # Sublane packing granularity: 8 rows (f32), 16 (bf16/f16), 32 (int8/fp8).
    return max(8, 32 // max(1, itemsize))


def _bytes_per_group_row(d, itemsize):
    # Conservative live-VMEM bytes per group row at peak:
    #   * double-buffered (tile_g, 3D) input block
    #   * the three (tile_g, D) slices held in the input dtype
    #   * two simultaneously-live f32 diff/square temporaries
    return (2 * 3 * d + 3 * d) * itemsize + 2 * d * 4


def _pick_tile_g(g, d, itemsize, vmem_budget_bytes=20 * 1024 * 1024):
    """Largest group-row tile whose accounted peak VMEM fits the budget,
    rounded to the dtype's sublane packing, with >= 2 grid steps for large G
    (v7x megacore sharding).  Budget is safe under the default scoped VMEM on
    v5e (with the vmem_limit_bytes we pass) and well under v6e/v7x physical."""
    sub = _sublane_multiple(itemsize)
    bytes_per_row = _bytes_per_group_row(d, itemsize)
    max_rows = max(sub, vmem_budget_bytes // bytes_per_row)
    if g <= 128:
        return _round_up(g, sub)                 # single small block
    # Big tiles for HBM-roofline streaming, but never a single whole-array
    # block: cap at ceil(g/2) so the "parallel" axis has >= 2 steps.
    tile = min(int(max_rows), -(-g // 2))
    tile = max(sub, (tile // sub) * sub)
    # Rebalance so the last tile is not mostly padding.
    num_tiles = -(-g // tile)
    tile = _round_up(-(-g // num_tiles), sub)
    return tile


def _double_margin_kernel(x_ref, out_ref, *, d, margin, beta, directed):
    """x_ref: (tile_g, 3*D) block of packed triplet groups (input dtype).
    out_ref: (tile_g, 1) f32 per-group margin losses for this tile."""
    # Per-slice loads in the input dtype; no full-block f32 upcast.
    e0 = x_ref[:, 0 * d:1 * d]
    e1 = x_ref[:, 1 * d:2 * d]
    e2 = x_ref[:, 2 * d:3 * d]

    def dist(a, b):
        # Subtract in the native dtype (bf16 VALU on v6e/v7x); upcast only the
        # diff for the square/accumulate.
        diff = (a - b).astype(jnp.float32)
        return jnp.sqrt(jnp.sum(diff * diff, axis=-1, keepdims=True))

    d01 = dist(e0, e1)
    d02 = dist(e0, e2)

    def margin_losses(d_ap, d_an):
        # detail.hinge(a, b) == max(0, b - a)
        positive_losses = jnp.maximum(d_ap - (beta - margin), 0.0)
        negative_losses = jnp.maximum((beta + margin) - d_an, 0.0)
        return positive_losses + negative_losses

    if directed:
        losses = margin_losses(d01, d02)
    else:
        d12 = dist(e1, e2)
        losses = (margin_losses(d01, d02) + margin_losses(d01, d12)) * 0.5

    out_ref[...] = losses


def double_margin_loss(embeddings, *, margin, beta, directed, tile_g=None):
    """Pallas wrapper. embeddings: (3*G, D) float array (f32 or bf16)."""
    n, d = embeddings.shape
    assert n % 3 == 0, "number of embeddings must be a multiple of 3"
    g = n // 3
    itemsize = jnp.dtype(embeddings.dtype).itemsize
    sub = _sublane_multiple(itemsize)

    # Free row-major view: groups are contiguous, so (3G, D) -> (G, 3D) is a
    # pure reshape with no HBM data movement.
    x = embeddings.reshape(g, 3 * d)

    if tile_g is None:
        tile_g = _pick_tile_g(g, d, itemsize)
    tile_g = max(sub, _round_up(int(tile_g), sub))
    tile_g = min(tile_g, _round_up(g, sub))

    num_tiles = -(-g // tile_g)
    g_padded = num_tiles * tile_g
    if g_padded != g:
        # Pad instead of falling back to a single whole-array block.
        # TODO(synk): a masked tail tile (cdiv grid, no pad copy) would avoid
        # this one-time pad for awkward group counts.
        x = jnp.pad(x, ((0, g_padded - g), (0, 0)))

    # Scoped VMEM limit consistent with the tile heuristic's accounting.
    peak_bytes = tile_g * _bytes_per_group_row(d, itemsize)
    vmem_limit = int(max(32 * 1024 * 1024,
                         min(2 * peak_bytes, 100 * 1024 * 1024)))

    kernel = functools.partial(
        _double_margin_kernel,
        d=d,
        margin=float(margin),
        beta=float(beta),
        directed=bool(directed),
    )

    per_group = pl.pallas_call(
        kernel,
        out_shape=jax.ShapeDtypeStruct((g_padded, 1), jnp.float32),
        grid=(num_tiles,),
        in_specs=[pl.BlockSpec((tile_g, 3 * d), lambda i: (i, 0))],
        out_specs=pl.BlockSpec((tile_g, 1), lambda i: (i, 0)),
        compiler_params=pltpu.CompilerParams(
            dimension_semantics=("parallel",),   # no serial accumulator
            vmem_limit_bytes=vmem_limit),
    )(x)

    # Drop padded groups; final mean is a tiny XLA reduce outside the kernel.
    return jnp.mean(per_group[:g, 0])


def _reference_loss(embeddings, margin, beta, directed):
    g = embeddings.shape[0] // 3
    grp = embeddings.reshape(g, 3, -1).astype(jnp.float32)
    d01 = jnp.linalg.norm(grp[:, 0] - grp[:, 1], axis=-1)
    d02 = jnp.linalg.norm(grp[:, 0] - grp[:, 2], axis=-1)
    d12 = jnp.linalg.norm(grp[:, 1] - grp[:, 2], axis=-1)

    def ml(d_ap, d_an):
        return (jnp.maximum(d_ap - (beta - margin), 0.0)
                + jnp.maximum((beta + margin) - d_an, 0.0))

    if directed:
        losses = ml(d01, d02)
    else:
        losses = (ml(d01, d02) + ml(d01, d12)) / 2.0
    return jnp.mean(losses)


if __name__ == "__main__":
    key = jax.random.PRNGKey(0)
    num_groups = 16          # -> 48 embedding rows
    hidden = 32
    margin = 0.2
    beta = 1.2

    embeddings = jax.random.normal(key, (3 * num_groups, hidden), jnp.float32)

    ok = True
    for directed in (False, True):
        loss = double_margin_loss(
            embeddings, margin=margin, beta=beta, directed=directed)
        loss = jax.block_until_ready(loss)
        ref = _reference_loss(embeddings, margin, beta, directed)
        if not jnp.allclose(loss, ref, rtol=1e-5, atol=1e-5):
            ok = False
            print(f"MISMATCH directed={directed}: kernel={loss} ref={ref}")

    # Non-divisible group count exercises the padded-tail path (no single
    # whole-array block): 13 groups, explicit small tile.
    emb_odd = jax.random.normal(key, (3 * 13, hidden), jnp.float32)
    loss_odd = jax.block_until_ready(
        double_margin_loss(emb_odd, margin=margin, beta=beta, directed=False,
                           tile_g=8))
    ref_odd = _reference_loss(emb_odd, margin, beta, False)
    if not jnp.allclose(loss_odd, ref_odd, rtol=1e-5, atol=1e-5):
        ok = False
        print(f"MISMATCH padded-tail: kernel={loss_odd} ref={ref_odd}")

    # bf16 input path (no wrapper-side upcast; kernel subtracts in bf16 and
    # upcasts only the diff).
    emb_bf16 = embeddings.astype(jnp.bfloat16)
    loss_bf16 = jax.block_until_ready(
        double_margin_loss(emb_bf16, margin=margin, beta=beta, directed=False))
    ref_bf16 = _reference_loss(emb_bf16, margin, beta, False)
    if not jnp.allclose(loss_bf16, ref_bf16, rtol=2e-2, atol=2e-2):
        ok = False
        print(f"MISMATCH bf16: kernel={loss_bf16} ref={ref_bf16}")

    if ok:
        print("KERNEL_OK")
</pallas_src>

<mosaic_0001>
module attributes {stable_mosaic.version = 11 : i64} {
  func.func @_double_margin_kernel(%arg0: i32, %arg1: memref<16x96xf32, #tpu.memory_space<vmem>>, %arg2: memref<16x1xf32, #tpu.memory_space<vmem>>) attributes {dimension_semantics = [#tpu.dimension_semantics<parallel>], iteration_bounds = array<i64: 1>, scalar_prefetch = 0 : i64, scratch_operands = 0 : i64, tpu.core_type = #tpu.core_type<tc>, window_params = [{transform_indices = @transform_0, window_bounds = array<i64: 16, 96>}, {transform_indices = @transform_1, window_bounds = array<i64: 16, 1>}]} {
    %c0 = arith.constant 0 : index
    %c0_0 = arith.constant 0 : index
    %0 = vector.load %arg1[%c0, %c0_0] : memref<16x96xf32, #tpu.memory_space<vmem>>, vector<16x32xf32>
    %c0_1 = arith.constant 0 : index
    %c32 = arith.constant 32 : index
    %1 = vector.load %arg1[%c0_1, %c32] : memref<16x96xf32, #tpu.memory_space<vmem>>, vector<16x32xf32>
    %c0_2 = arith.constant 0 : index
    %c64 = arith.constant 64 : index
    %2 = vector.load %arg1[%c0_2, %c64] : memref<16x96xf32, #tpu.memory_space<vmem>>, vector<16x32xf32>
    %3 = arith.subf %0, %1 : vector<16x32xf32>
    %4 = arith.mulf %3, %3 : vector<16x32xf32>
    %cst = arith.constant dense<0.000000e+00> : vector<16xf32>
    %5 = vector.multi_reduction <add>, %4, %cst [1] : vector<16x32xf32> to vector<16xf32>
    %6 = vector.shape_cast %5 : vector<16xf32> to vector<16x1xf32>
    %7 = math.sqrt %6 : vector<16x1xf32>
    %8 = arith.subf %0, %2 : vector<16x32xf32>
    %9 = arith.mulf %8, %8 : vector<16x32xf32>
    %cst_3 = arith.constant dense<0.000000e+00> : vector<16xf32>
    %10 = vector.multi_reduction <add>, %9, %cst_3 [1] : vector<16x32xf32> to vector<16xf32>
    %11 = vector.shape_cast %10 : vector<16xf32> to vector<16x1xf32>
    %12 = math.sqrt %11 : vector<16x1xf32>
    %13 = arith.subf %1, %2 : vector<16x32xf32>
    %14 = arith.mulf %13, %13 : vector<16x32xf32>
    %cst_4 = arith.constant dense<0.000000e+00> : vector<16xf32>
    %15 = vector.multi_reduction <add>, %14, %cst_4 [1] : vector<16x32xf32> to vector<16xf32>
    %16 = vector.shape_cast %15 : vector<16xf32> to vector<16x1xf32>
    %17 = math.sqrt %16 : vector<16x1xf32>
    %cst_5 = arith.constant 1.000000e+00 : f32
    %18 = vector.broadcast %cst_5 : f32 to vector<16x1xf32>
    %19 = arith.subf %7, %18 : vector<16x1xf32>
    %cst_6 = arith.constant 0.000000e+00 : f32
    %20 = vector.broadcast %cst_6 : f32 to vector<16x1xf32>
    %21 = arith.maximumf %19, %20 : vector<16x1xf32>
    %cst_7 = arith.constant 1.400000e+00 : f32
    %22 = vector.broadcast %cst_7 : f32 to vector<16x1xf32>
    %23 = arith.subf %22, %12 : vector<16x1xf32>
    %cst_8 = arith.constant 0.000000e+00 : f32
    %24 = vector.broadcast %cst_8 : f32 to vector<16x1xf32>
    %25 = arith.maximumf %23, %24 : vector<16x1xf32>
    %26 = arith.addf %21, %25 : vector<16x1xf32>
    %cst_9 = arith.constant 1.000000e+00 : f32
    %27 = vector.broadcast %cst_9 : f32 to vector<16x1xf32>
    %28 = arith.subf %7, %27 : vector<16x1xf32>
    %cst_10 = arith.constant 0.000000e+00 : f32
    %29 = vector.broadcast %cst_10 : f32 to vector<16x1xf32>
    %30 = arith.maximumf %28, %29 : vector<16x1xf32>
    %cst_11 = arith.constant 1.400000e+00 : f32
    %31 = vector.broadcast %cst_11 : f32 to vector<16x1xf32>
    %32 = arith.subf %31, %17 : vector<16x1xf32>
    %cst_12 = arith.constant 0.000000e+00 : f32
    %33 = vector.broadcast %cst_12 : f32 to vector<16x1xf32>
    %34 = arith.maximumf %32, %33 : vector<16x1xf32>
    %35 = arith.addf %30, %34 : vector<16x1xf32>
    %36 = arith.addf %26, %35 : vector<16x1xf32>
    %cst_13 = arith.constant 5.000000e-01 : f32
    %37 = vector.broadcast %cst_13 : f32 to vector<16x1xf32>
    %38 = arith.mulf %36, %37 : vector<16x1xf32>
    %c0_14 = arith.constant 0 : index
    %c0_15 = arith.constant 0 : index
    %39 = vector.load %arg2[%c0_14, %c0_15] : memref<16x1xf32, #tpu.memory_space<vmem>>, vector<16x1xf32>
    tpu.vector_store %arg2[%c0_14, %c0_15], %38 {strides = array<i32>} : memref<16x1xf32, #tpu.memory_space<vmem>>, vector<16x1xf32>,
    return
  }
  func.func @transform_0(%arg0: i32) -> (i32, i32) {
    %c0_i32 = arith.constant 0 : i32
    %c0_i32_0 = arith.constant 0 : i32
    return %arg0, %c0_i32 : i32, i32
  }
  func.func @transform_1(%arg0: i32) -> (i32, i32) {
    %c0_i32 = arith.constant 0 : i32
    %c0_i32_0 = arith.constant 0 : i32
    return %arg0, %c0_i32 : i32, i32
  }
}

</mosaic_0001>

<bundles_post_ra>
// kernel: tpu_custom_call.1
= control target key start
LH: loop header
LB: loop body
LE: loop exit
PB: predicated region body
PF: predicated region fallthrough
CT: control target
= control target key end

     0   :  { %6 = vsyncpa [#allocation3], 0  ;;  %s186_s6 = smov [#allocation2]   ;;  %s225_s0 = inlined_call_operand.hbm [shape: f32[16,96], index: 0, kind: input, shape index: {}]   ;;  %s226_s1 = inlined_call_operand.vmem [shape: f32[16,1], index: 1, kind: output, shape index: {}]  }
   0x1   :  { %s12_s7 = sshll.u32 %s186_s6, 4  ;;  %s162_s10 = scalar_lea.hbm %s225_s0, 256  ;;  %s13_s7 = int_to_ptr.vmem [resolvable:$true] %s12_s7 }
   0x2   :  { %p163_p0 = scmp.ne.s32.totalorder %s225_s0, %s162_s10  ;;  %p166_p1 = scmp.lt.u32.totalorder %s162_s10, %s225_s0 }
   0x4   :  { %p168_p2 = pnand %p166_p1, %p163_p0 }
   0x6   :  { %171 = shalt.err (!%p168_p2)
}
   0x7   :  { %s172_s15 = scalar_lea.vmem %s13_s7, 256  ;;  %p177_p4 = scmp.lt.s32.totalorder %s13_s7, %s13_s7 }
   0x8   :  { %p173_p3 = scmp.ne.s32.totalorder %s13_s7, %s172_s15  ;;  %p178_p5 = scmp.lt.s32.totalorder %s172_s15, %s172_s15 }
   0xa   :  { %p179_p6 = por %p178_p5, %p177_p4 }
   0xc   :  { %p180_p7 = pnand %p179_p6, %p173_p3 }
   0xe   :  { %183 = shalt.err (!%p180_p7)
}
   0xf   :  { %s187_s16 = smov 128   ;;  %s188_s17 = smov 8  }
  0x10   :  { %18 = dma.hbm_to_vmem [thread:$0]  %s225_s0, 256, %s13_s7, [#allocation3], %s187_s16, %s187_s16, %s188_s17  }
  0x11   :  { %184 = dma.done.wait [#allocation3], 256  }
  0x12   :  { %185 = vsyncadd [#allocation3], 4294967040  ;;  %v22_v0 = vld [vmem:[#allocation2] sm:$0xff]  ;;  %s189_s20 = smov 96   ;;  %s190_s21 = smov 64   ;;  %v23_v1 = vld [vmem:[#allocation2 + $0x8] sm:$0xff] }
  0x13   :  { %26 = vrot.lane.b32.xlu0 %v22_v0, %s189_s20  ;;  %57 = vrot.lane.b32.xlu1 %v22_v0, %s190_s21  ;;  %vm36_vm0 = vcmask 261120   ;;  %vm135_vm13 = vcmask 7168  }
  0x17   :  { %28 = vrot.lane.b32.xlu0 %v23_v1, %s189_s20  ;;  %59 = vrot.lane.b32.xlu1 %v23_v1, %s190_s21 }
  0x85   :  { %v27_v2 = vpop.permute.xlu0 %26  ;;  %v58_v8 = vpop.permute.xlu1 %57 }
  0x86   :  { %v32_v3 = vsub.f32 %v22_v0, %v27_v2  ;;  %v63_v9 = vsub.f32 %v22_v0, %v58_v8 }
  0x88   :  { %v34_v4 = vmul.f32 %v32_v3, %v32_v3  ;;  %v65_v11 = vmul.f32 %v63_v9, %v63_v9 }
  0x89   :  { %v29_v5 = vpop.permute.xlu0 %28  ;;  %v60_v10 = vpop.permute.xlu1 %59 }
  0x8a   :  { %v33_v6 = vsub.f32 %v23_v1, %v29_v5  ;;  %89 = vrot.lane.b32.xlu0 %v34_v4, %s189_s20  ;;  %v64_v12 = vsub.f32 %v23_v1, %v60_v10  ;;  %v37_v13 = vsel %vm36_vm0, %v34_v4, 0.0  ;;  %v67_v15 = vsel %vm36_vm0, %v65_v11, 0.0 }
  0x8c   :  { %v35_v7 = vmul.f32 %v33_v6, %v33_v6  ;;  %v66_v14 = vmul.f32 %v64_v12, %v64_v12 }
  0x8e   :  { %91 = vrot.lane.b32.xlu1 %v35_v7, %s189_s20  ;;  %v70_v16 = vsel %vm36_vm0, %v66_v14, 0.0  ;;  %v40_v17 = vsel %vm36_vm0, %v35_v7, 0.0 }
  0xa9   :  { %38 = vadd.xlane.f32.xlu0 %v37_v13 }
  0xad   :  { %68 = vadd.xlane.f32.xlu0 %v67_v15 }
  0xb1   :  { %71 = vadd.xlane.f32.xlu0 %v70_v16 }
  0xb2   :  { %41 = vadd.xlane.f32.xlu1 %v40_v17 }
  0xfc   :  { %v90_v18 = vpop.permute.xlu0 %89 }
  0xfd   :  { %v95_v19 = vsel %vm36_vm0, %v90_v18, 0.0 }
  0xfe   :  { %96 = vadd.xlane.f32.xlu1 %v95_v19 }
 0x100   :  { %v92_v20 = vpop.permute.xlu1 %91 }
 0x101   :  { %v98_v21 = vsel %vm36_vm0, %v92_v20, 0.0 }
 0x102   :  { %99 = vadd.xlane.f32.xlu0 %v98_v21 }
 0x136   :  { %v39_v22 = vpop.xlane.xlu0 %38 }
 0x137   :  { %vm45_vm2 = vcmp.eq.f32.partialorder %v39_v22, inf  ;;  %v48_v39 = vand.u32 2147483648, %v39_v22  ;;  %vm47_vm5 = vcmp.eq.f32.partialorder %v39_v22, 0.0 }
 0x13a   :  { %v69_v23 = vpop.xlane.xlu0 %68 }
 0x13b   :  { %150 = vrsqrt.f32 %v69_v23  ;;  %vm75_vm1 = vcmp.eq.f32.partialorder %v69_v23, inf  ;;  %v78_v33 = vand.u32 2147483648, %v69_v23  ;;  %vm77_vm3 = vcmp.eq.f32.partialorder %v69_v23, 0.0 }
 0x13c   :  { %152 = vrsqrt.f32 %v39_v22 }
 0x13e   :  { %v72_v24 = vpop.xlane.xlu0 %71 }
 0x13f   :  { %v42_v25 = vpop.xlane.xlu1 %41  ;;  %154 = vrsqrt.f32 %v72_v24  ;;  %vm82_vm4 = vcmp.eq.f32.partialorder %v72_v24, inf  ;;  %v85_v42 = vand.u32 2147483648, %v72_v24  ;;  %vm84_vm7 = vcmp.eq.f32.partialorder %v72_v24, 0.0 }
 0x140   :  { %156 = vrsqrt.f32 %v42_v25  ;;  %vm52_vm6 = vcmp.eq.f32.partialorder %v42_v25, inf  ;;  %v55_v47 = vand.u32 2147483648, %v42_v25  ;;  %vm54_vm8 = vcmp.eq.f32.partialorder %v42_v25, 0.0 }
 0x145   :  { %v151_v26 = vpop.eup %150 }
 0x146   :  { %v153_v27 = vpop.eup %152  ;;  %v74_v29 = vmul.f32 %v151_v26, %v69_v23 }
 0x147   :  { %v44_v31 = vmul.f32 %v153_v27, %v39_v22 }
 0x148   :  { %v76_v35 = vsel %vm75_vm1, %v69_v23, %v74_v29 }
 0x149   :  { %v155_v30 = vpop.eup %154  ;;  %v46_v36 = vsel %vm45_vm2, %v39_v22, %v44_v31  ;;  %v79_v40 = vsel %vm77_vm3, %v78_v33, %v76_v35 }
 0x14a   :  { %v157_v32 = vpop.eup %156  ;;  %v81_v38 = vmul.f32 %v155_v30, %v72_v24  ;;  %v49_v41 = vsel %vm47_vm5, %v48_v39, %v46_v36  ;;  %v119_v46 = vsub.f32 1.4, %v79_v40 }
 0x14b   :  { %v51_v37 = vmul.f32 %v157_v32, %v42_v25  ;;  %v143_v48 = vadd.f32 -1.0, %v49_v41 }
 0x14c   :  { %v83_v44 = vsel %vm82_vm4, %v72_v24, %v81_v38  ;;  %v121_v55 = vmax.f32 %v119_v46, 0.0 }
 0x14d   :  { %v53_v43 = vsel %vm52_vm6, %v42_v25, %v51_v37  ;;  %v86_v51 = vsel %vm84_vm7, %v85_v42, %v83_v44  ;;  %v117_v61 = vmax.f32 %v143_v48, 0.0 }
 0x14e   :  { %v56_v50 = vsel %vm54_vm8, %v55_v47, %v53_v43  ;;  %v120_v58 = vsub.f32 1.4, %v86_v51 }
 0x14f   :  { %v144_v57 = vadd.f32 -1.0, %v56_v50  ;;  %v123_v1 = vadd.f32 %v121_v55, %v117_v61 }
 0x150   :  { %v122_v4 = vmax.f32 %v120_v58, 0.0 }
 0x151   :  { %v118_v3 = vmax.f32 %v144_v57, 0.0 }
 0x153   :  { %v124_v9 = vadd.f32 %v122_v4, %v118_v3 }
 0x18b   :  { %v97_v28 = vpop.xlane.xlu1 %96 }
 0x18c   :  { %158 = vrsqrt.f32 %v97_v28  ;;  %vm103_vm9 = vcmp.eq.f32.partialorder %v97_v28, inf  ;;  %v106_v52 = vand.u32 2147483648, %v97_v28  ;;  %vm105_vm10 = vcmp.eq.f32.partialorder %v97_v28, 0.0 }
 0x18f   :  { %v100_v34 = vpop.xlane.xlu0 %99 }
 0x190   :  { %160 = vrsqrt.f32 %v100_v34  ;;  %vm110_vm11 = vcmp.eq.f32.partialorder %v100_v34, inf  ;;  %v113_v62 = vand.u32 2147483648, %v100_v34  ;;  %vm112_vm12 = vcmp.eq.f32.partialorder %v100_v34, 0.0 }
 0x196   :  { %v159_v45 = vpop.eup %158 }
 0x197   :  { %v102_v49 = vmul.f32 %v159_v45, %v97_v28 }
 0x199   :  { %v104_v53 = vsel %vm103_vm9, %v97_v28, %v102_v49 }
 0x19a   :  { %v161_v54 = vpop.eup %160  ;;  %v107_v56 = vsel %vm105_vm10, %v106_v52, %v104_v53 }
 0x19b   :  { %v125_v59 = vsub.f32 1.4, %v107_v56  ;;  %v109_v60 = vmul.f32 %v161_v54, %v100_v34 }
 0x19d   :  { %v127_v63 = vmax.f32 %v125_v59, 0.0  ;;  %v111_v0 = vsel %vm110_vm11, %v100_v34, %v109_v60 }
 0x19e   :  { %v114_v2 = vsel %vm112_vm12, %v113_v62, %v111_v0 }
 0x19f   :  { %v129_v5 = vadd.f32 %v127_v63, %v117_v61  ;;  %v126_v6 = vsub.f32 1.4, %v114_v2 }
 0x1a1   :  { %v131_v7 = vadd.f32 %v129_v5, %v123_v1  ;;  %v128_v8 = vmax.f32 %v126_v6, 0.0 }
 0x1a3   :  { %v133_v10 = vmul.f32 0.5, %v131_v7  ;;  %v130_v11 = vadd.f32 %v128_v8, %v118_v3 }
 0x1a5   :  { %136 = vst.msk [vmem:[%s226_s1] sm:$0xff] %vm135_vm13, %v133_v10  ;;  %v132_v12 = vadd.f32 %v130_v11, %v124_v9 }
 0x1a7   :  { %v134_v13 = vmul.f32 0.5, %v132_v12 }
 0x1a9   :  { %137 = vst.msk [vmem:[%s226_s1 + $0x8] sm:$0xff] %vm135_vm13, %v134_v13 }
 0x1aa   :  { %142 = vsyncpa [#allocation3], 1 }

</bundles_post_ra>
